<compile_context>
chip_gen: v7x
topology: tpu7x:2x2x1
jax: 0.10.0
libtpu: 0.0.40
codegen_flags: <defaults>
</compile_context>

<pallas_src>
import functools
import math

import jax
import jax.numpy as jnp
from jax.experimental import pallas as pl
from jax.experimental.pallas import tpu as pltpu


def _round_up(x, m):
    return ((x + m - 1) // m) * m


def _apply_act(y, act):
    if act == "relu":
        return jnp.maximum(y, 0.0)
    if act == "elu":
        # expm1 of the clamped value: exact near 0, never overflows in the
        # unselected where-branch.
        return jnp.where(y > 0, y, jnp.expm1(jnp.minimum(y, 0.0)))
    if act == "tanh":
        return jnp.tanh(y)
    if act == "sigmoid":
        return jax.nn.sigmoid(y)
    return y  # None -> identity (final 'output' dense layer)


# --------------------------------------------------------------------------
# Single fused Pallas kernel: the whole dense forward pass for one M-tile.
#   refs: n_branches x-tiles [TM, feats_pad_i], weight slab [R, LANE] (bf16),
#         bias slab [Bp, LANE] (f32), output tile [TM, LANE] (f32).
# All static metadata (row offsets, K sizes, bias rows, activations) is bound
# via functools.partial at init time.
# --------------------------------------------------------------------------
def _fused_forward_kernel(*refs, n_branches, branch_ops, chunk_ops,
                          chunk_bias_idx, post_ops, post_acts, act):
    x_refs = refs[:n_branches]
    w_ref = refs[n_branches]        # bf16 packed weight slab
    b_ref = refs[n_branches + 1]    # f32 packed bias slab
    o_ref = refs[-1]

    def dense(h_bf16, row_off, k, bias_idx, a):
        w = w_ref[row_off:row_off + k, :]                       # static slice
        y = jnp.dot(h_bf16, w, preferred_element_type=jnp.float32)
        y = y + b_ref[bias_idx:bias_idx + 1, :]                 # f32 bias add
        return _apply_act(y, a)                                 # f32 act

    # ---- per-branch dense stacks (activations never leave VMEM/vregs) ----
    branch_outs = []
    for bi in range(n_branches):
        h = x_refs[bi][...].astype(jnp.bfloat16)
        for (row_off, k, bias_idx) in branch_ops[bi]:
            h = dense(h, row_off, k, bias_idx, act).astype(jnp.bfloat16)
        branch_outs.append(h)

    # ---- "concatenate" + first post-concat dense, fused as a sum of
    #      per-branch matmuls (concat(h0,h1) @ W == h0 @ W[:d0] + h1 @ W[d0:])
    acc = None
    for bi in range(n_branches):
        row_off, k = chunk_ops[bi]
        w = w_ref[row_off:row_off + k, :]
        part = jnp.dot(branch_outs[bi], w, preferred_element_type=jnp.float32)
        acc = part if acc is None else acc + part
    h = _apply_act(acc + b_ref[chunk_bias_idx:chunk_bias_idx + 1, :],
                   post_acts[0])

    # ---- remaining hidden layers + final output layer (lane-padded) ----
    for li, (row_off, k, bias_idx) in enumerate(post_ops):
        h = dense(h.astype(jnp.bfloat16), row_off, k, bias_idx,
                  post_acts[li + 1])

    # Lane-dense store: [TM, LANE] is (8,128)-aligned.
    o_ref[...] = h.astype(o_ref.dtype)


# --------------------------------------------------------------------------
# Parameter init (torch.nn.Linear-style distribution), canonical [K, N] layout
# --------------------------------------------------------------------------
def init_linear(key, in_f, out_f):
    kw, kb = jax.random.split(key)
    bound = 1.0 / math.sqrt(in_f)
    w = jax.random.uniform(kw, (out_f, in_f), jnp.float32, -bound, bound)
    b = jax.random.uniform(kb, (out_f,), jnp.float32, -bound, bound)
    return jnp.transpose(w), b.reshape(1, out_f)   # pre-transposed once


# --------------------------------------------------------------------------
# build_graph equivalent (forward-pass semantics, dense configuration)
# --------------------------------------------------------------------------
class BuildGraphJAX:
    ROW_ALIGN = 16   # bf16 sublane packing: keep slab row offsets 16-aligned

    def __init__(self, key, input_shapes, model_layers, params):
        self.act = params.get("act_func", "relu")
        self.n_out = int(params["n_out"])
        self.branch_names = sorted(n for n in input_shapes if n != "output")
        nb = len(self.branch_names)

        # Uniform lane width for all intermediate activations / weight N dims.
        sizes = [self.n_out, 1]
        for name in self.branch_names:
            for lname, size in model_layers[name]:
                if lname == "dense":
                    sizes.append(int(size))
        for lname, size in model_layers["output"]:
            if lname == "dense":
                sizes.append(int(size))
        self.lane = _round_up(max(sizes), 128)
        lane = self.lane

        # ---- per-branch dense stacks (f32 reference params kept) ----------
        self.ref_branch_params = {}
        in_feats_pads = []
        branch_out_feats = {}
        branch_has_layers = {}
        for name in self.branch_names:
            feats = int(input_shapes[name][1])
            in_feats_pads.append(_round_up(feats, self.ROW_ALIGN))
            layers = []
            for lname, size in model_layers[name]:
                assert lname == "dense", f"unsupported branch layer {lname}"
                key, sub = jax.random.split(key)
                layers.append(init_linear(sub, feats, int(size)))
                feats = int(size)
            self.ref_branch_params[name] = layers
            branch_out_feats[name] = feats
            branch_has_layers[name] = len(layers) > 0
        self.in_feats_pads = tuple(in_feats_pads)

        # ---- hidden_output stack (after concatenate) + final output dense --
        feats = sum(branch_out_feats[n] for n in self.branch_names)
        ref_post = []
        for lname, size in model_layers["output"]:
            if lname == "concatenate":
                continue    # fused into the first post-concat split matmul
            assert lname == "dense", f"unsupported output layer {lname}"
            key, sub = jax.random.split(key)
            w, b = init_linear(sub, feats, int(size))
            ref_post.append((w, b, self.act))
            feats = int(size)
        key, sub = jax.random.split(key)
        wf, bf = init_linear(sub, feats, self.n_out)
        ref_post.append((wf, bf, None))        # final dense, no activation
        self.ref_post = ref_post

        # ---- pack everything into ONE bf16 weight slab + ONE f32 bias slab -
        w_blocks, b_rows = [], []
        row = 0

        def add_w(w_kn, k_pad):
            nonlocal row
            blk = jnp.zeros((k_pad, lane), jnp.float32)
            blk = blk.at[:w_kn.shape[0], :w_kn.shape[1]].set(w_kn)
            w_blocks.append(blk)
            off = row
            row += k_pad
            return off

        def add_b(b_1n):
            b_rows.append(jnp.zeros((lane,), jnp.float32)
                          .at[:b_1n.shape[-1]].set(b_1n.reshape(-1)))
            return len(b_rows) - 1

        branch_ops = []
        for bi, name in enumerate(self.branch_names):
            ops = []
            k_pad = self.in_feats_pads[bi]
            for (w, b) in self.ref_branch_params[name]:
                ops.append((add_w(w, k_pad), k_pad, add_b(b)))
                k_pad = lane
            branch_ops.append(tuple(ops))
        self.branch_ops = tuple(branch_ops)

        # First post-concat layer: split its weight rows per branch, once.
        w0, b0, a0 = ref_post[0]
        chunk_ops, off_rows = [], 0
        for bi, name in enumerate(self.branch_names):
            f = branch_out_feats[name]
            w_chunk = w0[off_rows:off_rows + f, :]
            off_rows += f
            k_pad = lane if branch_has_layers[name] else self.in_feats_pads[bi]
            chunk_ops.append((add_w(w_chunk, k_pad), k_pad))
        self.chunk_ops = tuple(chunk_ops)
        self.chunk_bias_idx = add_b(b0)

        post_acts = [a0]
        post_ops = []
        for (w, b, a) in ref_post[1:]:
            post_ops.append((add_w(w, lane), lane, add_b(b)))
            post_acts.append(a)
        self.post_ops = tuple(post_ops)
        self.post_acts = tuple(post_acts)

        self.w_slab = jnp.concatenate(w_blocks, axis=0).astype(jnp.bfloat16)
        b_slab = jnp.stack(b_rows, axis=0)
        self.b_slab = jnp.pad(
            b_slab, ((0, _round_up(len(b_rows), 8) - len(b_rows)), (0, 0)))

        self._kernel = functools.partial(
            _fused_forward_kernel,
            n_branches=nb,
            branch_ops=self.branch_ops,
            chunk_ops=self.chunk_ops,
            chunk_bias_idx=self.chunk_bias_idx,
            post_ops=self.post_ops,
            post_acts=self.post_acts,
            act=self.act,
        )
        # One trace per batch size; all arg prep + pallas_call live inside.
        self._jit_forward = jax.jit(self._forward_impl)

    # ------------------------------------------------------------------ #
    def _forward_impl(self, w_slab, b_slab, *xs):
        m = xs[0].shape[0]
        lane = self.lane
        tm = min(512, _round_up(max(m, 1), 8))     # batch tile (multiple of 8)
        m_pad = _round_up(max(m, 1), tm)

        inputs = []
        for xi, fpad in zip(xs, self.in_feats_pads):
            xi = xi.astype(jnp.float32)
            pad_m, pad_f = m_pad - xi.shape[0], fpad - xi.shape[1]
            if pad_m or pad_f:
                xi = jnp.pad(xi, ((0, pad_m), (0, pad_f)))
            inputs.append(xi)

        grid = (m_pad // tm,)
        in_specs = [pl.BlockSpec((tm, fpad), lambda i: (i, 0))
                    for fpad in self.in_feats_pads]
        # Param slabs: constant block index -> loaded once, VMEM-resident.
        in_specs.append(pl.BlockSpec(tuple(w_slab.shape), lambda i: (0, 0)))
        in_specs.append(pl.BlockSpec(tuple(b_slab.shape), lambda i: (0, 0)))
        out_specs = pl.BlockSpec((tm, lane), lambda i: (i, 0))

        # Cost estimate (static, computed once per trace).
        all_ops = [op[:2] for ops in self.branch_ops for op in ops]
        all_ops += list(self.chunk_ops)
        all_ops += [op[:2] for op in self.post_ops]
        flops = sum(2 * m_pad * k * lane for (_off, k) in all_ops)
        n_acts = sum(len(ops) for ops in self.branch_ops) + len(self.post_acts)
        trans = n_acts * m_pad * lane if self.act == "elu" else 0
        bytes_acc = sum(int(a.size) * a.dtype.itemsize for a in inputs)
        bytes_acc += int(w_slab.size) * 2 + int(b_slab.size) * 4
        bytes_acc += m_pad * lane * 4

        # Tight VMEM budget: resident slabs (x2) + double-buffered x/out tiles
        # + live intermediates, with 1.5x margin (safe on v7x's 64 MiB VMEM).
        vmem = 2 * (int(w_slab.size) * 2 + int(b_slab.size) * 4)
        vmem += sum(2 * tm * fpad * 4 for fpad in self.in_feats_pads)
        vmem += 2 * tm * lane * 4
        vmem += (len(self.branch_names) + 4) * tm * lane * 4
        vmem_limit = min(max(int(vmem * 1.5) + (1 << 20), 4 << 20), 32 << 20)

        out_pad = pl.pallas_call(
            self._kernel,
            out_shape=jax.ShapeDtypeStruct((m_pad, lane), jnp.float32),
            grid=grid,
            in_specs=in_specs,
            out_specs=out_specs,
            cost_estimate=pl.CostEstimate(
                flops=int(flops), transcendentals=int(trans),
                bytes_accessed=int(bytes_acc)),
            compiler_params=pltpu.CompilerParams(
                dimension_semantics=("parallel",),   # megacore sharding on v7x
                vmem_limit_bytes=vmem_limit,
            ),
        )(*inputs, w_slab, b_slab)

        # Trim padding (kept inside jit; consumers needing raw speed can take
        # the padded slab directly).
        return out_pad[:m, :self.n_out]

    # ------------------------------------------------------------------ #
    def __call__(self, x):
        xs = [jnp.asarray(x[name], jnp.float32) for name in self.branch_names]
        return self._jit_forward(self.w_slab, self.b_slab, *xs)

    # Pure-jnp reference mirroring the kernel's bf16-operand / f32-accumulate
    # numerics, for correctness checking.
    def reference_forward(self, x):
        def dense_ref(h, w, b, a):
            y = jnp.dot(h.astype(jnp.bfloat16), w.astype(jnp.bfloat16),
                        preferred_element_type=jnp.float32) + b
            return _apply_act(y, a)

        outs = []
        for name in self.branch_names:
            h = jnp.asarray(x[name], jnp.float32)
            for (w, b) in self.ref_branch_params[name]:
                h = dense_ref(h, w, b, self.act)
            outs.append(h)
        h = jnp.concatenate(outs, axis=1) if len(outs) > 1 else outs[0]
        for (w, b, a) in self.ref_post:
            h = dense_ref(h, w, b, a)
        return h


# --------------------------------------------------------------------------
if __name__ == "__main__":
    key = jax.random.PRNGKey(0)
    B = 2
    input_shapes = {
        "branch_a": [B, 16],
        "branch_b": [B, 24],
    }
    model_layers = {
        "branch_a": [("dense", 32), ("dense", 16)],
        "branch_b": [("dense", 32), ("dense", 16)],
        "output": [("concatenate", ()), ("dense", 32)],
    }
    params = {"n_out": 4, "act_func": "relu"}

    k_model, k_a, k_b = jax.random.split(key, 3)
    x = {
        "branch_a": jax.random.normal(k_a, (B, 16), jnp.float32),
        "branch_b": jax.random.normal(k_b, (B, 24), jnp.float32),
    }

    model = BuildGraphJAX(k_model, input_shapes, model_layers, params)
    y = jax.block_until_ready(model(x))
    assert y.shape == (B, params["n_out"]), y.shape
    assert bool(jnp.all(jnp.isfinite(y)))

    y_ref = jax.block_until_ready(model.reference_forward(x))
    assert jnp.allclose(y, y_ref, rtol=1e-2, atol=1e-2), (y, y_ref)

    # Second call with the same shape hits the jit cache (no retrace).
    y2 = jax.block_until_ready(model(x))
    assert jnp.allclose(y, y2)

    print("KERNEL_OK")
</pallas_src>

<mosaic_0001>
module attributes {stable_mosaic.version = 11 : i64} {
  func.func @_fused_forward_kernel(%arg0: i32, %arg1: memref<8x16xf32, #tpu.memory_space<vmem>>, %arg2: memref<8x32xf32, #tpu.memory_space<vmem>>, %arg3: memref<688x128xbf16, #tpu.memory_space<vmem>>, %arg4: memref<8x128xf32, #tpu.memory_space<vmem>>, %arg5: memref<8x128xf32, #tpu.memory_space<vmem>>) attributes {dimension_semantics = [#tpu.dimension_semantics<parallel>], iteration_bounds = array<i64: 1>, scalar_prefetch = 0 : i64, scratch_operands = 0 : i64, tpu.core_type = #tpu.core_type<tc>, window_params = [{transform_indices = @transform_0, window_bounds = array<i64: 8, 16>}, {transform_indices = @transform_1, window_bounds = array<i64: 8, 32>}, {pipeline_mode = #tpu.pipeline_mode<synchronous>, transform_indices = @transform_2, window_bounds = array<i64: 688, 128>}, {pipeline_mode = #tpu.pipeline_mode<synchronous>, transform_indices = @transform_3, window_bounds = array<i64: 8, 128>}, {transform_indices = @transform_4, window_bounds = array<i64: 8, 128>}]} {
    %c0 = arith.constant 0 : index
    %c0_0 = arith.constant 0 : index
    %0 = vector.load %arg1[%c0, %c0_0] : memref<8x16xf32, #tpu.memory_space<vmem>>, vector<8x16xf32>
    %1 = arith.truncf %0 : vector<8x16xf32> to vector<8x16xbf16>
    %c0_1 = arith.constant 0 : index
    %c0_2 = arith.constant 0 : index
    %2 = vector.load %arg3[%c0_1, %c0_2] : memref<688x128xbf16, #tpu.memory_space<vmem>>, vector<16x128xbf16>
    %cst = arith.constant dense<0.000000e+00> : vector<8x128xf32>
    %3 = tpu.matmul %1, %2, %cst {dimension_numbers = #tpu.dot_dimension_numbers<[1], [0], [0], [1], [0, 0, 1, 1], [], []>} : vector<8x16xbf16>, vector<16x128xbf16>, vector<8x128xf32> -> vector<8x128xf32>
    %c0_3 = arith.constant 0 : index
    %c0_4 = arith.constant 0 : index
    %4 = vector.load %arg4[%c0_3, %c0_4] : memref<8x128xf32, #tpu.memory_space<vmem>>, vector<1x128xf32>
    %5 = vector.broadcast %4 : vector<1x128xf32> to vector<8x128xf32>
    %6 = arith.addf %3, %5 : vector<8x128xf32>
    %cst_5 = arith.constant 0.000000e+00 : f32
    %7 = vector.broadcast %cst_5 : f32 to vector<8x128xf32>
    %8 = arith.maximumf %6, %7 : vector<8x128xf32>
    %9 = arith.truncf %8 : vector<8x128xf32> to vector<8x128xbf16>
    %c16 = arith.constant 16 : index
    %c0_6 = arith.constant 0 : index
    %10 = vector.load %arg3[%c16, %c0_6] : memref<688x128xbf16, #tpu.memory_space<vmem>>, vector<128x128xbf16>
    %cst_7 = arith.constant dense<0.000000e+00> : vector<8x128xf32>
    %11 = tpu.matmul %9, %10, %cst_7 {dimension_numbers = #tpu.dot_dimension_numbers<[1], [0], [0], [1], [0, 0, 1, 1], [], []>} : vector<8x128xbf16>, vector<128x128xbf16>, vector<8x128xf32> -> vector<8x128xf32>
    %c1 = arith.constant 1 : index
    %c0_8 = arith.constant 0 : index
    %12 = vector.load %arg4[%c1, %c0_8] : memref<8x128xf32, #tpu.memory_space<vmem>>, vector<1x128xf32>
    %13 = vector.broadcast %12 : vector<1x128xf32> to vector<8x128xf32>
    %14 = arith.addf %11, %13 : vector<8x128xf32>
    %cst_9 = arith.constant 0.000000e+00 : f32
    %15 = vector.broadcast %cst_9 : f32 to vector<8x128xf32>
    %16 = arith.maximumf %14, %15 : vector<8x128xf32>
    %17 = arith.truncf %16 : vector<8x128xf32> to vector<8x128xbf16>
    %c0_10 = arith.constant 0 : index
    %c0_11 = arith.constant 0 : index
    %18 = vector.load %arg2[%c0_10, %c0_11] : memref<8x32xf32, #tpu.memory_space<vmem>>, vector<8x32xf32>
    %19 = arith.truncf %18 : vector<8x32xf32> to vector<8x32xbf16>
    %c144 = arith.constant 144 : index
    %c0_12 = arith.constant 0 : index
    %20 = vector.load %arg3[%c144, %c0_12] : memref<688x128xbf16, #tpu.memory_space<vmem>>, vector<32x128xbf16>
    %cst_13 = arith.constant dense<0.000000e+00> : vector<8x128xf32>
    %21 = tpu.matmul %19, %20, %cst_13 {dimension_numbers = #tpu.dot_dimension_numbers<[1], [0], [0], [1], [0, 0, 1, 1], [], []>} : vector<8x32xbf16>, vector<32x128xbf16>, vector<8x128xf32> -> vector<8x128xf32>
    %c2 = arith.constant 2 : index
    %c0_14 = arith.constant 0 : index
    %22 = vector.load %arg4[%c2, %c0_14] : memref<8x128xf32, #tpu.memory_space<vmem>>, vector<1x128xf32>
    %23 = vector.broadcast %22 : vector<1x128xf32> to vector<8x128xf32>
    %24 = arith.addf %21, %23 : vector<8x128xf32>
    %cst_15 = arith.constant 0.000000e+00 : f32
    %25 = vector.broadcast %cst_15 : f32 to vector<8x128xf32>
    %26 = arith.maximumf %24, %25 : vector<8x128xf32>
    %27 = arith.truncf %26 : vector<8x128xf32> to vector<8x128xbf16>
    %c176 = arith.constant 176 : index
    %c0_16 = arith.constant 0 : index
    %28 = vector.load %arg3[%c176, %c0_16] : memref<688x128xbf16, #tpu.memory_space<vmem>>, vector<128x128xbf16>
    %cst_17 = arith.constant dense<0.000000e+00> : vector<8x128xf32>
    %29 = tpu.matmul %27, %28, %cst_17 {dimension_numbers = #tpu.dot_dimension_numbers<[1], [0], [0], [1], [0, 0, 1, 1], [], []>} : vector<8x128xbf16>, vector<128x128xbf16>, vector<8x128xf32> -> vector<8x128xf32>
    %c3 = arith.constant 3 : index
    %c0_18 = arith.constant 0 : index
    %30 = vector.load %arg4[%c3, %c0_18] : memref<8x128xf32, #tpu.memory_space<vmem>>, vector<1x128xf32>
    %31 = vector.broadcast %30 : vector<1x128xf32> to vector<8x128xf32>
    %32 = arith.addf %29, %31 : vector<8x128xf32>
    %cst_19 = arith.constant 0.000000e+00 : f32
    %33 = vector.broadcast %cst_19 : f32 to vector<8x128xf32>
    %34 = arith.maximumf %32, %33 : vector<8x128xf32>
    %35 = arith.truncf %34 : vector<8x128xf32> to vector<8x128xbf16>
    %c304 = arith.constant 304 : index
    %c0_20 = arith.constant 0 : index
    %36 = vector.load %arg3[%c304, %c0_20] : memref<688x128xbf16, #tpu.memory_space<vmem>>, vector<128x128xbf16>
    %cst_21 = arith.constant dense<0.000000e+00> : vector<8x128xf32>
    %37 = tpu.matmul %17, %36, %cst_21 {dimension_numbers = #tpu.dot_dimension_numbers<[1], [0], [0], [1], [0, 0, 1, 1], [], []>} : vector<8x128xbf16>, vector<128x128xbf16>, vector<8x128xf32> -> vector<8x128xf32>
    %c432 = arith.constant 432 : index
    %c0_22 = arith.constant 0 : index
    %38 = vector.load %arg3[%c432, %c0_22] : memref<688x128xbf16, #tpu.memory_space<vmem>>, vector<128x128xbf16>
    %cst_23 = arith.constant dense<0.000000e+00> : vector<8x128xf32>
    %39 = tpu.matmul %35, %38, %cst_23 {dimension_numbers = #tpu.dot_dimension_numbers<[1], [0], [0], [1], [0, 0, 1, 1], [], []>} : vector<8x128xbf16>, vector<128x128xbf16>, vector<8x128xf32> -> vector<8x128xf32>
    %40 = arith.addf %37, %39 : vector<8x128xf32>
    %c4 = arith.constant 4 : index
    %c0_24 = arith.constant 0 : index
    %41 = vector.load %arg4[%c4, %c0_24] : memref<8x128xf32, #tpu.memory_space<vmem>>, vector<1x128xf32>
    %42 = vector.broadcast %41 : vector<1x128xf32> to vector<8x128xf32>
    %43 = arith.addf %40, %42 : vector<8x128xf32>
    %cst_25 = arith.constant 0.000000e+00 : f32
    %44 = vector.broadcast %cst_25 : f32 to vector<8x128xf32>
    %45 = arith.maximumf %43, %44 : vector<8x128xf32>
    %46 = arith.truncf %45 : vector<8x128xf32> to vector<8x128xbf16>
    %c560 = arith.constant 560 : index
    %c0_26 = arith.constant 0 : index
    %47 = vector.load %arg3[%c560, %c0_26] : memref<688x128xbf16, #tpu.memory_space<vmem>>, vector<128x128xbf16>
    %cst_27 = arith.constant dense<0.000000e+00> : vector<8x128xf32>
    %48 = tpu.matmul %46, %47, %cst_27 {dimension_numbers = #tpu.dot_dimension_numbers<[1], [0], [0], [1], [0, 0, 1, 1], [], []>} : vector<8x128xbf16>, vector<128x128xbf16>, vector<8x128xf32> -> vector<8x128xf32>
    %c5 = arith.constant 5 : index
    %c0_28 = arith.constant 0 : index
    %49 = vector.load %arg4[%c5, %c0_28] : memref<8x128xf32, #tpu.memory_space<vmem>>, vector<1x128xf32>
    %50 = vector.broadcast %49 : vector<1x128xf32> to vector<8x128xf32>
    %51 = arith.addf %48, %50 : vector<8x128xf32>
    %c0_29 = arith.constant 0 : index
    %c0_30 = arith.constant 0 : index
    %52 = vector.load %arg5[%c0_29, %c0_30] : memref<8x128xf32, #tpu.memory_space<vmem>>, vector<8x128xf32>
    tpu.vector_store %arg5[%c0_29, %c0_30], %51 {strides = array<i32>} : memref<8x128xf32, #tpu.memory_space<vmem>>, vector<8x128xf32>,
    return
  }
  func.func @transform_0(%arg0: i32) -> (i32, i32) {
    %c0_i32 = arith.constant 0 : i32
    %c0_i32_0 = arith.constant 0 : i32
    return %arg0, %c0_i32 : i32, i32
  }
  func.func @transform_1(%arg0: i32) -> (i32, i32) {
    %c0_i32 = arith.constant 0 : i32
    %c0_i32_0 = arith.constant 0 : i32
    return %arg0, %c0_i32 : i32, i32
  }
  func.func @transform_2(%arg0: i32) -> (i32, i32) {
    %c0_i32 = arith.constant 0 : i32
    %c0_i32_0 = arith.constant 0 : i32
    %c0_i32_1 = arith.constant 0 : i32
    return %c0_i32, %c0_i32_0 : i32, i32
  }
  func.func @transform_3(%arg0: i32) -> (i32, i32) {
    %c0_i32 = arith.constant 0 : i32
    %c0_i32_0 = arith.constant 0 : i32
    %c0_i32_1 = arith.constant 0 : i32
    return %c0_i32, %c0_i32_0 : i32, i32
  }
  func.func @transform_4(%arg0: i32) -> (i32, i32) {
    %c0_i32 = arith.constant 0 : i32
    %c0_i32_0 = arith.constant 0 : i32
    return %arg0, %c0_i32 : i32, i32
  }
}

</mosaic_0001>

<bundles_post_ra>
// kernel: _forward_impl.1
= control target key start
LH: loop header
LB: loop body
LE: loop exit
PB: predicated region body
PF: predicated region fallthrough
CT: control target
= control target key end

     0   :  { %9 = vsyncpa [#allocation3], 0  ;;  %s1002_s15 = smov [#allocation2]   ;;  %s1128_s0 = inlined_call_operand.vmem [shape: f32[8,16], index: 0, kind: input, shape index: {}]   ;;  %s1129_s1 = inlined_call_operand.vmem [shape: f32[8,32], index: 1, kind: input, shape index: {}]   ;;  %s1130_s2 = inlined_call_operand.hbm [shape: bf16[688,128], index: 2, kind: input, shape index: {}]   ;;  %s1131_s3 = inlined_call_operand.vmem [shape: f32[8,128], index: 3, kind: input, shape index: {}]   ;;  %s1132_s4 = inlined_call_operand.vmem [shape: f32[8,128], index: 4, kind: output, shape index: {}]  }
   0x1   :  { %s19_s16 = sshll.u32 %s1002_s15, 4  ;;  %s978_s19 = scalar_lea.hbm %s1130_s2, 5504  ;;  %s20_s16 = int_to_ptr.vmem [resolvable:$true] %s19_s16 }
   0x2   :  { %p979_p0 = scmp.ne.s32.totalorder %s1130_s2, %s978_s19  ;;  %p982_p1 = scmp.lt.u32.totalorder %s978_s19, %s1130_s2 }
   0x4   :  { %p984_p2 = pnand %p982_p1, %p979_p0 }
   0x6   :  { %987 = shalt.err (!%p984_p2)
}
   0x7   :  { %s988_s24 = scalar_lea.vmem %s20_s16, 5504  ;;  %p993_p4 = scmp.lt.s32.totalorder %s20_s16, %s20_s16 }
   0x8   :  { %p989_p3 = scmp.ne.s32.totalorder %s20_s16, %s988_s24  ;;  %p994_p5 = scmp.lt.s32.totalorder %s988_s24, %s988_s24 }
   0xa   :  { %p995_p6 = por %p994_p5, %p993_p4 }
   0xc   :  { %p996_p7 = pnand %p995_p6, %p989_p3 }
   0xe   :  { %999 = shalt.err (!%p996_p7)
}
   0xf   :  { %s1003_s25 = smov 64   ;;  %s1004_s26 = smov 4  }
  0x10   :  { %25 = dma.hbm_to_vmem [thread:$0]  %s1130_s2, 5504, %s20_s16, [#allocation3], %s1003_s25, %s1003_s25, %s1004_s26  }
  0x11   :  { %1000 = dma.done.wait [#allocation3], 5504  }
  0x12   :  { %1001 = vsyncadd [#allocation3], 4294961792  ;;  %v1005_v0 = vmov 0.0   ;;  %vm1006_vm0 = vmmov 0   ;;  %v935_v1 = vld [vmem:[#allocation2] sm:$0xff]   ;;  %vm47_vm1 = vcmask 130048  }
  0x13   :  { %816 = vmatprep.subr.bf16.mxu0 %v1005_v0  ;;  %818 = vmatprep.mubr.msk.bf16.mxu0 %vm1006_vm0, %v1005_v0  ;;  %v32_v2 = vld [vmem:[%s1128_s0] sm:$0xff]  ;;  %v936_v4 = vld [vmem:[#allocation2 + $0x48] sm:$0xff]   ;;  %v937_v6 = vld [vmem:[#allocation2 + $0x50] sm:$0xff]   ;;  %vm227_vm2 = vcmask 261120  }
  0x14   :  { %822 = vmatprep.subr.bf16.mxu1 %v1005_v0  ;;  %838 = vmatprep.mubr.msk.bf16.mxu1 %vm1006_vm0, %v1005_v0  ;;  %v33_v3 = vpack.c.bf16 %v32_v2, %v32_v2  ;;  %v938_v5 = vld [vmem:[#allocation2 + $0x8] sm:$0xff]   ;;  %v204_v7 = vld [vmem:[%s1129_s1] sm:$0xff]  ;;  %v939_v8 = vld [vmem:[#allocation2 + $0x10] sm:$0xff]  }
  0x15   :  { %817 = vmatpush3.bf16.msra.mxu0 %v935_v1  ;;  %823 = vmatpush3.bf16.msra.mxu1 %v938_v5  ;;  %v205_v9 = vpack.c.bf16 %v204_v7, %v204_v7  ;;  %v941_v10 = vld [vmem:[#allocation2 + $0x58] sm:$0xff]   ;;  %v942_v12 = vld [vmem:[#allocation2 + $0x20] sm:$0xff]   ;;  %v945_v14 = vld [vmem:[#allocation2 + $0x68] sm:$0xff]  }
  0x16   :  { %842 = vmatprep.subr.bf16.mxu0 %v1005_v0  ;;  %824 = vmatprep.subr.bf16.mxu1 %v1005_v0  ;;  %v940_v11 = vld [vmem:[#allocation2 + $0x18] sm:$0xff]   ;;  %v943_v13 = vld [vmem:[#allocation2 + $0x60] sm:$0xff]   ;;  %v944_v15 = vld [vmem:[#allocation2 + $0x28] sm:$0xff]  }
  0x17   :  { %v947_v16 = vld [vmem:[#allocation2 + $0x70] sm:$0xff]   ;;  %v948_v18 = vld [vmem:[#allocation2 + $0x38] sm:$0xff]   ;;  %v950_v20 = vld [vmem:[#allocation2 + $0x40] sm:$0xff]  }
  0x18   :  { %819 = vmatmul.mubr.msk.bf16.vlgmr.msra.gmra.mrb[0].mxu0 %vm47_vm1, %v33_v3  ;;  %v946_v17 = vld [vmem:[#allocation2 + $0x30] sm:$0xff]   ;;  %v949_v19 = vld [vmem:[#allocation2 + $0x78] sm:$0xff]   ;;  %v951_v21 = vld [vmem:[#allocation2 + $0x80] sm:$0xff]  }
  0x19   :  { %843 = vmatpush3.bf16.msra.mxu0 %v936_v4  ;;  %846 = vmatprep.mubr.msk.bf16.mxu0 %vm1006_vm0, %v1005_v0  ;;  %v952_v22 = vld [vmem:[#allocation2 + $0x88] sm:$0xff]   ;;  %v953_v23 = vld [vmem:[#allocation2 + $0x90] sm:$0xff]   ;;  %v715_v24 = vld [vmem:[%s1131_s3] ss:$0 sm:$0xff] }
  0x1a   :  { %844 = vmatprep.subr.bf16.mxu0 %v1005_v0  ;;  %825 = vmatpush3.bf16.msra.mxu1 %v939_v8  ;;  %v956_v31 = vld [vmem:[#allocation2 + $0xd8] sm:$0xff]   ;;  %v727_v33 = vld [vmem:[%s1131_s3 + $0x2] ss:$0 sm:$0xff]  ;;  %v960_v42 = vld [vmem:[#allocation2 + $0xe8] sm:$0xff]  }
  0x1b   :  { %826 = vmatprep.subr.bf16.mxu1 %v1005_v0  ;;  %v958_v35 = vld [vmem:[#allocation2 + $0xe0] sm:$0xff]   ;;  %v954_v41 = vld [vmem:[#allocation2 + $0x98] sm:$0xff]   ;;  %v962_v45 = vld [vmem:[#allocation2 + $0xf0] sm:$0xff]  }
  0x1c   :  { %v955_v44 = vld [vmem:[#allocation2 + $0xa0] sm:$0xff]   ;;  %v957_v46 = vld [vmem:[#allocation2 + $0xa8] sm:$0xff]   ;;  %v959_v47 = vld [vmem:[#allocation2 + $0xb0] sm:$0xff]  }
  0x1d   :  { %845 = vmatpush3.bf16.msra.mxu0 %v937_v6  ;;  %v961_v48 = vld [vmem:[#allocation2 + $0xb8] sm:$0xff]   ;;  %v963_v49 = vld [vmem:[#allocation2 + $0xc0] sm:$0xff]   ;;  %v965_v51 = vld [vmem:[#allocation2 + $0xc8] sm:$0xff]  }
  0x1e   :  { %850 = vmatprep.subr.bf16.mxu0 %v1005_v0  ;;  %827 = vmatpush3.bf16.msra.mxu1 %v940_v11  ;;  %v964_v50 = vld [vmem:[#allocation2 + $0xf8] sm:$0xff]   ;;  %v966_v52 = vld [vmem:[#allocation2 + $0x100] sm:$0xff]   ;;  %v967_v53 = vld [vmem:[#allocation2 + $0xd0] sm:$0xff]  }
  0x1f   :  { %828 = vmatprep.subr.bf16.mxu1 %v1005_v0  ;;  %v968_v54 = vld [vmem:[#allocation2 + $0x108] sm:$0xff]   ;;  %v969_v55 = vld [vmem:[#allocation2 + $0x110] sm:$0xff]   ;;  %v718_v56 = vld [vmem:[%s1131_s3 + $0x1] ss:$0 sm:$0xff] }
  0x20   :  { %847 = vmatmul.mubr.msk.bf16.vlgmr.msra.gmra.mrb[4].mxu0 %vm227_vm2, %v205_v9  ;;  %v731_v1 = vld [vmem:[%s1131_s3 + $0x3] ss:$0 sm:$0xff]  ;;  %v970_v8 = vld [vmem:[#allocation2 + $0x118] sm:$0xff]   ;;  %v972_v11 = vld [vmem:[#allocation2 + $0x128] sm:$0xff]  }
  0x21   :  { %851 = vmatpush3.bf16.msra.mxu0 %v941_v10  ;;  %866 = vmatprep.mubr.msk.bf16.mxu0 %vm1006_vm0, %v1005_v0  ;;  %v971_v10 = vld [vmem:[#allocation2 + $0x120] sm:$0xff]  }
  0x22   :  { %852 = vmatprep.subr.bf16.mxu0 %v1005_v0  ;;  %829 = vmatpush3.bf16.msra.mxu1 %v942_v12  ;;  %v973_v12 = vld [vmem:[#allocation2 + $0x130] sm:$0xff]  }
  0x23   :  { %830 = vmatprep.subr.bf16.mxu1 %v1005_v0 }
  0x25   :  { %853 = vmatpush3.bf16.msra.mxu0 %v943_v13  ;;  %v974_v13 = vld [vmem:[#allocation2 + $0x138] sm:$0xff]  }
  0x26   :  { %854 = vmatprep.subr.bf16.mxu0 %v1005_v0  ;;  %831 = vmatpush3.bf16.msra.mxu1 %v944_v15  ;;  %v976_v15 = vld [vmem:[#allocation2 + $0x148] sm:$0xff]  }
  0x27   :  { %832 = vmatprep.subr.bf16.mxu1 %v1005_v0 }
  0x29   :  { %855 = vmatpush3.bf16.msra.mxu0 %v945_v14  ;;  %v975_v14 = vld [vmem:[#allocation2 + $0x140] sm:$0xff]  }
  0x2a   :  { %856 = vmatprep.subr.bf16.mxu0 %v1005_v0  ;;  %833 = vmatpush3.bf16.msra.mxu1 %v946_v17 }
  0x2b   :  { %834 = vmatprep.subr.bf16.mxu1 %v1005_v0 }
  0x2d   :  { %857 = vmatpush3.bf16.msra.mxu0 %v947_v16  ;;  %v977_v16 = vld [vmem:[#allocation2 + $0x150] sm:$0xff]  }
  0x2e   :  { %858 = vmatprep.subr.bf16.mxu0 %v1005_v0  ;;  %835 = vmatpush3.bf16.msra.mxu1 %v948_v18 }
  0x2f   :  { %836 = vmatprep.subr.bf16.mxu1 %v1005_v0 }
  0x31   :  { %859 = vmatpush3.bf16.msra.mxu0 %v949_v19 }
  0x32   :  { %860 = vmatprep.subr.bf16.mxu0 %v1005_v0  ;;  %837 = vmatpush3.bf16.msra.mxu1 %v950_v20 }
  0x33   :  { %870 = vmatprep.subr.bf16.mxu1 %v1005_v0 }
  0x35   :  { %861 = vmatpush3.bf16.msra.mxu0 %v951_v21 }
  0x36   :  { %862 = vmatprep.subr.bf16.mxu0 %v1005_v0 }
  0x39   :  { %863 = vmatpush3.bf16.msra.mxu0 %v952_v22  ;;  %v756_v22 = vld [vmem:[%s1131_s3 + $0x4] ss:$0 sm:$0xff] }
  0x3a   :  { %864 = vmatprep.subr.bf16.mxu0 %v1005_v0 }
  0x3d   :  { %865 = vmatpush3.bf16.msra.mxu0 %v953_v23 }
  0x3e   :  { %890 = vmatprep.subr.bf16.mxu0 %v1005_v0 }
  0xeb   :  { %v85_v25 = vpop.f32.mrb[0].mxu0 }
  0xec   :  { %v86_v26 = vadd.f32 %v715_v24, %v85_v25  ;;  %v820_v27 = vpop.f32.mrb[1].mxu0 }
  0xed   :  { %v88_v28 = vpop.f32.mrb[2].mxu0 }
  0xee   :  { %v91_v29 = vmax.f32 %v86_v26, 0.0  ;;  %v821_v30 = vpop.f32.mrb[3].mxu0 }
  0xf0   :  { %v92_v32 = vpack.c.bf16 %v91_v29, %v91_v29 }
  0xf2   :  { %839 = vmatmul.mubr.bf16.vlgmr.msra.gmra.mrb[0].mxu1 %v92_v32 }
  0xf3   :  { %v265_v34 = vpop.f32.mrb[4].mxu0  ;;  %871 = vmatpush3.bf16.msra.mxu1 %v956_v31  ;;  %886 = vmatprep.mubr.msk.bf16.mxu1 %vm1006_vm0, %v1005_v0 }
  0xf4   :  { %v266_v36 = vadd.f32 %v727_v33, %v265_v34  ;;  %v848_v37 = vpop.f32.mrb[5].mxu0  ;;  %872 = vmatprep.subr.bf16.mxu1 %v1005_v0 }
  0xf5   :  { %v268_v38 = vpop.f32.mrb[6].mxu0 }
  0xf6   :  { %v271_v39 = vmax.f32 %v266_v36, 0.0  ;;  %v849_v40 = vpop.f32.mrb[7].mxu0 }
  0xf7   :  { %873 = vmatpush3.bf16.msra.mxu1 %v958_v35 }
  0xf8   :  { %v272_v43 = vpack.c.bf16 %v271_v39, %v271_v39  ;;  %874 = vmatprep.subr.bf16.mxu1 %v1005_v0 }
  0xfa   :  { %867 = vmatmul.mubr.bf16.vlgmr.msra.gmra.mrb[8].mxu0 %v272_v43 }
  0xfb   :  { %891 = vmatpush3.bf16.msra.mxu0 %v954_v41  ;;  %875 = vmatpush3.bf16.msra.mxu1 %v960_v42 }
  0xfc   :  { %892 = vmatprep.subr.bf16.mxu0 %v1005_v0  ;;  %876 = vmatprep.subr.bf16.mxu1 %v1005_v0 }
  0xfd   :  { %906 = vmatprep.mubr.msk.bf16.mxu0 %vm1006_vm0, %v1005_v0 }
  0xff   :  { %893 = vmatpush3.bf16.msra.mxu0 %v955_v44  ;;  %877 = vmatpush3.bf16.msra.mxu1 %v962_v45 }
 0x100   :  { %894 = vmatprep.subr.bf16.mxu0 %v1005_v0  ;;  %878 = vmatprep.subr.bf16.mxu1 %v1005_v0 }
 0x103   :  { %895 = vmatpush3.bf16.msra.mxu0 %v957_v46  ;;  %879 = vmatpush3.bf16.msra.mxu1 %v964_v50 }
 0x104   :  { %896 = vmatprep.subr.bf16.mxu0 %v1005_v0  ;;  %880 = vmatprep.subr.bf16.mxu1 %v1005_v0 }
 0x107   :  { %897 = vmatpush3.bf16.msra.mxu0 %v959_v47  ;;  %881 = vmatpush3.bf16.msra.mxu1 %v966_v52 }
 0x108   :  { %898 = vmatprep.subr.bf16.mxu0 %v1005_v0  ;;  %882 = vmatprep.subr.bf16.mxu1 %v1005_v0 }
 0x10b   :  { %899 = vmatpush3.bf16.msra.mxu0 %v961_v48  ;;  %883 = vmatpush3.bf16.msra.mxu1 %v968_v54 }
 0x10c   :  { %900 = vmatprep.subr.bf16.mxu0 %v1005_v0  ;;  %884 = vmatprep.subr.bf16.mxu1 %v1005_v0 }
 0x10f   :  { %901 = vmatpush3.bf16.msra.mxu0 %v963_v49  ;;  %885 = vmatpush3.bf16.msra.mxu1 %v969_v55 }
 0x110   :  { %902 = vmatprep.subr.bf16.mxu0 %v1005_v0  ;;  %910 = vmatprep.subr.bf16.mxu1 %v1005_v0 }
 0x113   :  { %903 = vmatpush3.bf16.msra.mxu0 %v965_v51 }
 0x114   :  { %904 = vmatprep.subr.bf16.mxu0 %v1005_v0 }
 0x117   :  { %905 = vmatpush3.bf16.msra.mxu0 %v967_v53 }
 0x1c5   :  { %v196_v57 = vpop.f32.mrb[0].mxu1 }
 0x1c6   :  { %v197_v58 = vadd.f32 %v718_v56, %v196_v57  ;;  %v840_v59 = vpop.f32.mrb[1].mxu1 }
 0x1c7   :  { %v199_v60 = vpop.f32.mrb[2].mxu1 }
 0x1c8   :  { %v202_v61 = vmax.f32 %v197_v58, 0.0  ;;  %v841_v62 = vpop.f32.mrb[3].mxu1 }
 0x1ca   :  { %v203_v63 = vpack.c.bf16 %v202_v61, %v202_v61 }
 0x1cc   :  { %907 = vmatmul.mubr.bf16.vlgmr.msra.gmra.mrb[12].mxu0 %v203_v63 }
 0x1cd   :  { %v376_v2 = vpop.f32.mrb[8].mxu0 }
 0x1ce   :  { %v377_v3 = vadd.f32 %v731_v1, %v376_v2  ;;  %v868_v4 = vpop.f32.mrb[9].mxu0 }
 0x1cf   :  { %v379_v5 = vpop.f32.mrb[10].mxu0 }
 0x1d0   :  { %v382_v6 = vmax.f32 %v377_v3, 0.0  ;;  %v869_v7 = vpop.f32.mrb[11].mxu0 }
 0x1d2   :  { %v383_v9 = vpack.c.bf16 %v382_v6, %v382_v6 }
 0x1d4   :  { %887 = vmatmul.mubr.bf16.vlgmr.msra.gmra.mrb[4].mxu1 %v383_v9 }
 0x1d5   :  { %911 = vmatpush3.bf16.msra.mxu1 %v970_v8  ;;  %926 = vmatprep.mubr.msk.bf16.mxu1 %vm1006_vm0, %v1005_v0 }
 0x1d6   :  { %912 = vmatprep.subr.bf16.mxu1 %v1005_v0 }
 0x1d9   :  { %913 = vmatpush3.bf16.msra.mxu1 %v971_v10 }
 0x1da   :  { %914 = vmatprep.subr.bf16.mxu1 %v1005_v0 }
 0x1dd   :  { %915 = vmatpush3.bf16.msra.mxu1 %v972_v11 }
 0x1de   :  { %916 = vmatprep.subr.bf16.mxu1 %v1005_v0 }
 0x1e1   :  { %917 = vmatpush3.bf16.msra.mxu1 %v973_v12 }
 0x1e2   :  { %918 = vmatprep.subr.bf16.mxu1 %v1005_v0 }
 0x1e5   :  { %919 = vmatpush3.bf16.msra.mxu1 %v974_v13 }
 0x1e6   :  { %920 = vmatprep.subr.bf16.mxu1 %v1005_v0 }
 0x1e9   :  { %921 = vmatpush3.bf16.msra.mxu1 %v975_v14 }
 0x1ea   :  { %922 = vmatprep.subr.bf16.mxu1 %v1005_v0 }
 0x1ed   :  { %923 = vmatpush3.bf16.msra.mxu1 %v976_v15 }
 0x1ee   :  { %924 = vmatprep.subr.bf16.mxu1 %v1005_v0  ;;  %v757_v0 = vld [vmem:[%s1131_s3 + $0x5] ss:$0 sm:$0xff] }
 0x1f1   :  { %925 = vmatpush3.bf16.msra.mxu1 %v977_v16 }
 0x29f   :  { %v586_v17 = vpop.f32.mrb[12].mxu0 }
 0x2a0   :  { %v908_v18 = vpop.f32.mrb[13].mxu0 }
 0x2a1   :  { %v589_v19 = vpop.f32.mrb[14].mxu0 }
 0x2a2   :  { %v909_v20 = vpop.f32.mrb[15].mxu0 }
 0x2a7   :  { %v498_v21 = vpop.f32.mrb[4].mxu1 }
 0x2a8   :  { %v587_v23 = vadd.f32 %v586_v17, %v498_v21  ;;  %v888_v24 = vpop.f32.mrb[5].mxu1 }
 0x2a9   :  { %v501_v25 = vpop.f32.mrb[6].mxu1 }
 0x2aa   :  { %v597_v26 = vadd.f32 %v756_v22, %v587_v23  ;;  %v889_v27 = vpop.f32.mrb[7].mxu1 }
 0x2ac   :  { %v598_v28 = vmax.f32 %v597_v26, 0.0 }
 0x2ae   :  { %v599_v29 = vpack.c.bf16 %v598_v28, %v598_v28 }
 0x2b0   :  { %927 = vmatmul.mubr.bf16.vlgmr.msra.gmra.mrb[8].mxu1 %v599_v29 }
 0x383   :  { %v703_v30 = vpop.f32.mrb[8].mxu1 }
 0x384   :  { %v704_v31 = vadd.f32 %v757_v0, %v703_v30  ;;  %v928_v32 = vpop.f32.mrb[9].mxu1 }
 0x385   :  { %v706_v33 = vpop.f32.mrb[10].mxu1 }
 0x386   :  { %709 = vst [vmem:[%s1132_s4] sm:$0xff] %v704_v31  ;;  %v929_v34 = vpop.f32.mrb[11].mxu1 }
 0x387   :  { %714 = vsyncpa [#allocation3], 1 }

</bundles_post_ra>
